<compile_context>
chip_gen: v7x
topology: tpu7x:2x2x1
jax: 0.10.0
libtpu: 0.0.40
codegen_flags: <defaults>
</compile_context>

<pallas_src>
import functools

import jax
import jax.numpy as jnp
from jax import lax
from jax.experimental import pallas as pl
from jax.experimental.pallas import tpu as pltpu


def _round_up(n, m):
    return -(-n // m) * m


def _conv1d_matmul_kernel(x_ref, w_ref, b_ref, o_ref, *, kernel_size, dilation,
                          in_kernel_im2col, tile_axis, activation, precision):
    # x_ref : (1, L_in_p, C_in)     resident padded sequence   (in-kernel im2col)
    #         (1, TL, K*C_in_p)     pre-built im2col patch     (wrapper im2col)
    # w_ref : (K*C_in_p, C_out_p)   fused weight
    # b_ref : (1, C_out_p)          f32 bias
    # o_ref : (1, TL, C_out_p)      one tile of output positions
    tl = o_ref.shape[1]

    if in_kernel_im2col:
        base = pl.multiple_of(pl.program_id(tile_axis) * tl, 8)
        taps = [x_ref[0, pl.ds(base + k * dilation, tl), :]
                for k in range(kernel_size)]
        patch = taps[0] if kernel_size == 1 else jnp.concatenate(taps, axis=1)
    else:
        patch = x_ref[0]

    acc = jnp.dot(patch, w_ref[...],
                  preferred_element_type=jnp.float32, precision=precision)
    y = acc + b_ref[...]
    if activation == "relu":
        y = jnp.maximum(y, 0.0)
    elif activation == "tanh":
        y = jnp.tanh(y)
    o_ref[0] = y.astype(o_ref.dtype)


def conv_norm(
    x,
    weight,
    bias=None,
    *,
    stride=1,
    padding=None,
    dilation=1,
    max_positions_per_tile=256,
    acc_budget_bytes=192 * 1024,
    use_bf16_mxu=True,          # production default: bf16 MXU inputs, f32 accumulate
    precision=None,
    activation=None,            # optional fused epilogue: None | "relu" | "tanh"
    out_dtype=None,
    channels_last_output=False,
):
    """1-D convolution matching Tacotron2 ConvNorm.forward (torch.nn.Conv1d).

    x: (B, C_in, L); weight: (C_out, C_in, K); bias: (C_out,) or None.
    Returns (B, C_out, L_out), or (B, L_out, C_out) if channels_last_output.

    Note: with use_bf16_mxu=True (default) the MXU sees bf16-rounded inputs;
    for bit-faithful f32 use use_bf16_mxu=False, precision=lax.Precision.HIGHEST.
    """
    B, C_in, L = x.shape
    C_out, C_in_w, K = weight.shape
    assert C_in_w == C_in
    if padding is None:
        assert K % 2 == 1
        padding = dilation * (K - 1) // 2

    L_out = (L + 2 * padding - dilation * (K - 1) - 1) // stride + 1
    assert L_out >= 1
    out_dtype = x.dtype if out_dtype is None else out_dtype

    # ---- lane-dense output channels (256-aligned on the 256-wide MXUs) ----
    c_align = 256 if C_out >= 256 else 128
    C_out_p = _round_up(C_out, c_align)

    # ---- output-position tile, capped so the f32 accumulator stays in vregs ----
    tl_cap = max(8, (acc_budget_bytes // 4 // C_out_p) // 8 * 8)
    tl_target = max(8, min(max_positions_per_tile, tl_cap))
    n_tiles = max(1, -(-L_out // tl_target))
    TL = _round_up(-(-L_out // n_tiles), 8)
    L_out_p = TL * n_tiles

    KC = K * C_in
    in_kernel_im2col = (C_in % 128 == 0) and (stride == 1)
    mxu_dtype = jnp.bfloat16 if use_bf16_mxu else x.dtype

    # ---- operand preparation (one-time layout plumbing in XLA) ----
    x_t = jnp.transpose(x, (0, 2, 1))                      # (B, L, C_in)

    if in_kernel_im2col:
        KC_p = KC                                          # multiple of 128 already
        L_in_p = L_out_p + dilation * (K - 1)
        pad_right = max(L_in_p - L - padding, 0)
        x_in = jnp.pad(x_t, ((0, 0), (padding, pad_right), (0, 0))).astype(mxu_dtype)
        x_block = (1, L_in_p, C_in)
    else:
        KC_p = _round_up(KC, 128)
        need = (L_out_p - 1) * stride + dilation * (K - 1) + 1
        pad_right = max(need - L - padding, 0)
        xp = jnp.pad(x_t, ((0, 0), (padding, pad_right), (0, 0)))
        span = (L_out_p - 1) * stride + 1
        taps = [xp[:, k * dilation: k * dilation + span: stride, :] for k in range(K)]
        x_in = taps[0] if K == 1 else jnp.concatenate(taps, axis=-1)  # (B, L_out_p, K*C_in)
        if KC_p != KC:
            x_in = jnp.pad(x_in, ((0, 0), (0, 0), (0, KC_p - KC)))
        x_in = x_in.astype(mxu_dtype)
        x_block = (1, TL, KC_p)

    # fused weight: (C_out, C_in, K) -> (K*C_in, C_out_p), zero-padded.
    w2 = jnp.transpose(weight, (2, 1, 0)).reshape(KC, C_out)
    w2 = jnp.pad(w2, ((0, KC_p - KC), (0, C_out_p - C_out))).astype(mxu_dtype)

    if bias is None:
        b2 = jnp.zeros((1, C_out_p), jnp.float32)
    else:
        b2 = jnp.pad(bias.astype(jnp.float32), (0, C_out_p - C_out)).reshape(1, C_out_p)

    # ---- grid: collapse the batch axis when B == 1 so the position tiles are
    #      what gets sharded across TensorCores on multi-TC chips ----
    collapse_batch = (B == 1)
    if collapse_batch:
        grid = (n_tiles,)
        dim_sem = ("parallel",)
        tile_axis = 0
        x_map = (lambda i: (0, 0, 0)) if in_kernel_im2col else (lambda i: (0, i, 0))
        w_map = lambda i: (0, 0)
        b_map = lambda i: (0, 0)
        o_map = lambda i: (0, i, 0)
    else:
        grid = (B, n_tiles)
        dim_sem = ("parallel", "parallel")
        tile_axis = 1
        x_map = (lambda b, i: (b, 0, 0)) if in_kernel_im2col else (lambda b, i: (b, i, 0))
        w_map = lambda b, i: (0, 0)
        b_map = lambda b, i: (0, 0)
        o_map = lambda b, i: (b, i, 0)

    # ---- VMEM budget derived from the actual resident blocks (with headroom) ----
    itx = jnp.dtype(mxu_dtype).itemsize
    ito = jnp.dtype(out_dtype).itemsize
    resident = (x_block[1] * x_block[2] * itx * 2          # x block (double-buffered)
                + KC_p * C_out_p * itx                     # weight (single buffer)
                + C_out_p * 4                              # bias
                + TL * C_out_p * ito * 2                   # output tile (double-buffered)
                + TL * C_out_p * 4)                        # f32 accumulator
    vmem_limit = int(min(max(resident * 2, 16 << 20), 64 << 20))

    flops = 2 * B * L_out_p * KC_p * C_out_p
    bytes_accessed = int(
        x_in.size * itx + w2.size * itx + b2.size * 4 + B * L_out_p * C_out_p * ito
    )

    kernel = functools.partial(
        _conv1d_matmul_kernel,
        kernel_size=K, dilation=dilation, in_kernel_im2col=in_kernel_im2col,
        tile_axis=tile_axis, activation=activation, precision=precision,
    )

    def _run(use_buffer_hint):
        # weight / bias have a constant block index: single-buffer them so no
        # pointless double-buffer VMEM is allocated.
        hint = dict(pipeline_mode=pl.Buffered(1)) if use_buffer_hint else {}
        grid_spec = pltpu.PrefetchScalarGridSpec(
            num_scalar_prefetch=0,
            grid=grid,
            in_specs=[
                pl.BlockSpec(x_block, x_map),
                pl.BlockSpec((KC_p, C_out_p), w_map, **hint),
                pl.BlockSpec((1, C_out_p), b_map, **hint),
            ],
            out_specs=pl.BlockSpec((1, TL, C_out_p), o_map),
        )
        return pl.pallas_call(
            kernel,
            out_shape=jax.ShapeDtypeStruct((B, L_out_p, C_out_p), out_dtype),
            grid_spec=grid_spec,
            compiler_params=pltpu.CompilerParams(
                dimension_semantics=dim_sem,
                vmem_limit_bytes=vmem_limit,
            ),
            cost_estimate=pl.CostEstimate(
                flops=flops, transcendentals=0, bytes_accessed=bytes_accessed
            ),
        )(x_in, w2, b2)

    try:
        y = _run(True)
    except Exception:
        # Graceful degradation on Pallas versions without per-BlockSpec
        # pipeline_mode support: same kernel, default double-buffering.
        y = _run(False)

    # drop padded positions / channels, restore requested layout.
    y = y[:, :L_out, :C_out]
    if channels_last_output:
        assert y.shape == (B, L_out, C_out)
        return y
    y = jnp.transpose(y, (0, 2, 1))
    assert y.shape == (B, C_out, L_out)
    return y


def init_conv_norm_params(key, in_channels, out_channels, kernel_size,
                          w_init_gain="linear", dtype=jnp.float32):
    """Xavier-uniform weight init (torch.nn.init.calculate_gain gains),
    PyTorch-default Conv1d bias init (uniform +/- 1/sqrt(fan_in))."""
    gains = {"linear": 1.0, "relu": 2.0 ** 0.5, "tanh": 5.0 / 3.0, "sigmoid": 1.0}
    gain = gains[w_init_gain]
    wkey, bkey = jax.random.split(key)
    fan_in = in_channels * kernel_size
    fan_out = out_channels * kernel_size
    bound_w = gain * (6.0 / (fan_in + fan_out)) ** 0.5
    weight = jax.random.uniform(
        wkey, (out_channels, in_channels, kernel_size), dtype=dtype,
        minval=-bound_w, maxval=bound_w)
    bound_b = 1.0 / (fan_in ** 0.5)
    bias = jax.random.uniform(
        bkey, (out_channels,), dtype=dtype, minval=-bound_b, maxval=bound_b)
    return weight, bias


def _ref_conv(x, w, b, *, stride, dilation, padding):
    y = lax.conv_general_dilated(
        x.astype(jnp.float32), w.astype(jnp.float32),
        window_strides=(stride,), padding=[(padding, padding)],
        rhs_dilation=(dilation,), dimension_numbers=("NCH", "OIH", "NCH"),
        precision=lax.Precision.HIGHEST)
    if b is not None:
        y = y + b.astype(jnp.float32)[None, :, None]
    return y


def _check(x, w, b, atol, **kw):
    y = jax.block_until_ready(conv_norm(x, w, b, **kw))
    stride = kw.get("stride", 1)
    dilation = kw.get("dilation", 1)
    K = w.shape[-1]
    padding = kw.get("padding")
    if padding is None:
        padding = dilation * (K - 1) // 2
    # Compare against a reference that sees the same (bf16-rounded) operands
    # the MXU sees; with use_bf16_mxu=False the comparison is exact-f32.
    if kw.get("use_bf16_mxu", True):
        xr = x.astype(jnp.bfloat16).astype(jnp.float32)
        wr = w.astype(jnp.bfloat16).astype(jnp.float32)
    else:
        xr, wr = x, w
    y_ref = _ref_conv(xr, wr, b, stride=stride, dilation=dilation, padding=padding)
    assert y.shape == y_ref.shape, (y.shape, y_ref.shape)
    err = float(jnp.max(jnp.abs(y.astype(jnp.float32) - y_ref)))
    assert err < atol, (err, atol)
    return err


if __name__ == "__main__":
    key = jax.random.PRNGKey(0)
    k1, k2, k3, k4, k5, k6 = jax.random.split(key, 6)

    # 1) Tacotron2-postnet-style layer: small C_in (wrapper im2col path),
    #    batched 2-D grid, multi-tile positions, bf16 MXU default.
    x1 = jax.random.normal(k1, (2, 32, 200), dtype=jnp.float32)
    w1, b1 = init_conv_norm_params(k2, 32, 64, 5, w_init_gain="tanh")
    _check(x1, w1, b1, atol=5e-3, max_positions_per_tile=64)

    # 2) Lane-aligned C_in (in-kernel im2col path) with B == 1 (collapsed grid).
    x2 = jax.random.normal(k3, (1, 128, 96), dtype=jnp.float32)
    w2, b2 = init_conv_norm_params(k4, 128, 48, 3, w_init_gain="relu")
    _check(x2, w2, b2, atol=5e-3, max_positions_per_tile=32)

    # 3) Strided + dilated conv in exact-f32 mode (strided positions computed
    #    directly in the patch, not by subsampling a stride-1 result).
    x3 = jax.random.normal(k5, (2, 16, 65), dtype=jnp.float32)
    w3, b3 = init_conv_norm_params(k6, 16, 24, 3, w_init_gain="linear")
    _check(x3, w3, b3, atol=1e-4, stride=2, dilation=2,
           use_bf16_mxu=False, precision=lax.Precision.HIGHEST)

    print("KERNEL_OK")
</pallas_src>

<mosaic_0001>
module attributes {stable_mosaic.version = 11 : i64} {
  func.func @_conv1d_matmul_kernel(%arg0: i32, %arg1: i32, %arg2: memref<1x56x256xbf16, #tpu.memory_space<vmem>>, %arg3: memref<256x128xbf16, #tpu.memory_space<vmem>>, %arg4: memref<1x128xf32, #tpu.memory_space<vmem>>, %arg5: memref<1x56x128xf32, #tpu.memory_space<vmem>>) attributes {dimension_semantics = [#tpu.dimension_semantics<parallel>, #tpu.dimension_semantics<parallel>], iteration_bounds = array<i64: 2, 4>, scalar_prefetch = 0 : i64, scratch_operands = 0 : i64, tpu.core_type = #tpu.core_type<tc>, window_params = [{transform_indices = @transform_0, window_bounds = array<i64: 1, 56, 256>}, {pipeline_mode = #tpu.pipeline_mode<synchronous>, transform_indices = @transform_1, window_bounds = array<i64: 256, 128>}, {pipeline_mode = #tpu.pipeline_mode<synchronous>, transform_indices = @transform_2, window_bounds = array<i64: 1, 128>}, {transform_indices = @transform_3, window_bounds = array<i64: 1, 56, 128>}]} {
    %c0 = arith.constant 0 : index
    %c0_0 = arith.constant 0 : index
    %c0_1 = arith.constant 0 : index
    %0 = vector.load %arg2[%c0, %c0_0, %c0_1] : memref<1x56x256xbf16, #tpu.memory_space<vmem>>, vector<1x56x256xbf16>
    %1 = vector.shape_cast %0 : vector<1x56x256xbf16> to vector<56x256xbf16>
    %c0_2 = arith.constant 0 : index
    %c0_3 = arith.constant 0 : index
    %2 = vector.load %arg3[%c0_2, %c0_3] : memref<256x128xbf16, #tpu.memory_space<vmem>>, vector<256x128xbf16>
    %cst = arith.constant dense<0.000000e+00> : vector<56x128xf32>
    %3 = tpu.matmul %1, %2, %cst {dimension_numbers = #tpu.dot_dimension_numbers<[1], [0], [0], [1], [0, 0, 1, 1], [], []>} : vector<56x256xbf16>, vector<256x128xbf16>, vector<56x128xf32> -> vector<56x128xf32>
    %c0_4 = arith.constant 0 : index
    %c0_5 = arith.constant 0 : index
    %4 = vector.load %arg4[%c0_4, %c0_5] : memref<1x128xf32, #tpu.memory_space<vmem>>, vector<1x128xf32>
    %5 = vector.broadcast %4 : vector<1x128xf32> to vector<56x128xf32>
    %6 = arith.addf %3, %5 : vector<56x128xf32>
    %c0_6 = arith.constant 0 : index
    %c0_7 = arith.constant 0 : index
    %c0_8 = arith.constant 0 : index
    %7 = vector.load %arg5[%c0_6, %c0_7, %c0_8] : memref<1x56x128xf32, #tpu.memory_space<vmem>>, vector<1x56x128xf32>
    %8 = vector.shape_cast %7 : vector<1x56x128xf32> to vector<56x128xf32>
    %9 = vector.shape_cast %6 : vector<56x128xf32> to vector<1x56x128xf32>
    tpu.vector_store %arg5[%c0_6, %c0_7, %c0_8], %9 {strides = array<i32>} : memref<1x56x128xf32, #tpu.memory_space<vmem>>, vector<1x56x128xf32>,
    return
  }
  func.func @transform_0(%arg0: i32, %arg1: i32) -> (i32, i32, i32) {
    %c0_i32 = arith.constant 0 : i32
    %c0_i32_0 = arith.constant 0 : i32
    return %arg0, %arg1, %c0_i32 : i32, i32, i32
  }
  func.func @transform_1(%arg0: i32, %arg1: i32) -> (i32, i32) {
    %c0_i32 = arith.constant 0 : i32
    %c0_i32_0 = arith.constant 0 : i32
    %c0_i32_1 = arith.constant 0 : i32
    return %c0_i32, %c0_i32_0 : i32, i32
  }
  func.func @transform_2(%arg0: i32, %arg1: i32) -> (i32, i32) {
    %c0_i32 = arith.constant 0 : i32
    %c0_i32_0 = arith.constant 0 : i32
    %c0_i32_1 = arith.constant 0 : i32
    return %c0_i32, %c0_i32_0 : i32, i32
  }
  func.func @transform_3(%arg0: i32, %arg1: i32) -> (i32, i32, i32) {
    %c0_i32 = arith.constant 0 : i32
    %c0_i32_0 = arith.constant 0 : i32
    return %arg0, %arg1, %c0_i32 : i32, i32, i32
  }
}

module attributes {stable_mosaic.version = 11 : i64} {
  func.func @_conv1d_matmul_kernel(%arg0: i32, %arg1: i32, %arg2: memref<1x56x256xbf16, #tpu.memory_space<vmem>>, %arg3: memref<256x128xbf16, #tpu.memory_space<vmem>>, %arg4: memref<1x128xf32, #tpu.memory_space<vmem>>, %arg5: memref<1x56x128xf32, #tpu.memory_space<vmem>>) attributes {dimension_semantics = [#tpu.dimension_semantics<parallel>, #tpu.dimension_semantics<parallel>], iteration_bounds = array<i64: 2, 4>, scalar_prefetch = 0 : i64, scratch_operands = 0 : i64, tpu.core_type = #tpu.core_type<tc>, window_params = [{transform_indices = @transform_0, window_bounds = array<i64: 1, 56, 256>}, {pipeline_mode = #tpu.pipeline_mode<synchronous>, transform_indices = @transform_1, window_bounds = array<i64: 256, 128>}, {pipeline_mode = #tpu.pipeline_mode<synchronous>, transform_indices = @transform_2, window_bounds = array<i64: 1, 128>}, {transform_indices = @transform_3, window_bounds = array<i64: 1, 56, 128>}]} {
    %c0 = arith.constant 0 : index
    %c0_0 = arith.constant 0 : index
    %c0_1 = arith.constant 0 : index
    %0 = vector.load %arg2[%c0, %c0_0, %c0_1] : memref<1x56x256xbf16, #tpu.memory_space<vmem>>, vector<1x56x256xbf16>
    %1 = vector.shape_cast %0 : vector<1x56x256xbf16> to vector<56x256xbf16>
    %c0_2 = arith.constant 0 : index
    %c0_3 = arith.constant 0 : index
    %2 = vector.load %arg3[%c0_2, %c0_3] : memref<256x128xbf16, #tpu.memory_space<vmem>>, vector<256x128xbf16>
    %cst = arith.constant dense<0.000000e+00> : vector<56x128xf32>
    %3 = tpu.matmul %1, %2, %cst {dimension_numbers = #tpu.dot_dimension_numbers<[1], [0], [0], [1], [0, 0, 1, 1], [], []>} : vector<56x256xbf16>, vector<256x128xbf16>, vector<56x128xf32> -> vector<56x128xf32>
    %c0_4 = arith.constant 0 : index
    %c0_5 = arith.constant 0 : index
    %4 = vector.load %arg4[%c0_4, %c0_5] : memref<1x128xf32, #tpu.memory_space<vmem>>, vector<1x128xf32>
    %5 = vector.broadcast %4 : vector<1x128xf32> to vector<56x128xf32>
    %6 = arith.addf %3, %5 : vector<56x128xf32>
    %c0_6 = arith.constant 0 : index
    %c0_7 = arith.constant 0 : index
    %c0_8 = arith.constant 0 : index
    %7 = vector.load %arg5[%c0_6, %c0_7, %c0_8] : memref<1x56x128xf32, #tpu.memory_space<vmem>>, vector<1x56x128xf32>
    %8 = vector.shape_cast %7 : vector<1x56x128xf32> to vector<56x128xf32>
    %9 = vector.shape_cast %6 : vector<56x128xf32> to vector<1x56x128xf32>
    tpu.vector_store %arg5[%c0_6, %c0_7, %c0_8], %9 {strides = array<i32>} : memref<1x56x128xf32, #tpu.memory_space<vmem>>, vector<1x56x128xf32>,
    return
  }
  func.func @transform_0(%arg0: i32, %arg1: i32) -> (i32, i32, i32) {
    %c0_i32 = arith.constant 0 : i32
    %c0_i32_0 = arith.constant 0 : i32
    return %arg0, %arg1, %c0_i32 : i32, i32, i32
  }
  func.func @transform_1(%arg0: i32, %arg1: i32) -> (i32, i32) {
    %c0_i32 = arith.constant 0 : i32
    %c0_i32_0 = arith.constant 0 : i32
    %c0_i32_1 = arith.constant 0 : i32
    return %c0_i32, %c0_i32_0 : i32, i32
  }
  func.func @transform_2(%arg0: i32, %arg1: i32) -> (i32, i32) {
    %c0_i32 = arith.constant 0 : i32
    %c0_i32_0 = arith.constant 0 : i32
    %c0_i32_1 = arith.constant 0 : i32
    return %c0_i32, %c0_i32_0 : i32, i32
  }
  func.func @transform_3(%arg0: i32, %arg1: i32) -> (i32, i32, i32) {
    %c0_i32 = arith.constant 0 : i32
    %c0_i32_0 = arith.constant 0 : i32
    return %arg0, %arg1, %c0_i32 : i32, i32, i32
  }
}

</mosaic_0001>

<bundles_post_ra>
// kernel: tpu_custom_call.1
= control target key start
LH: loop header
LB: loop body
LE: loop exit
PB: predicated region body
PF: predicated region fallthrough
CT: control target
= control target key end

     0   :  { %s1254_s0 = inlined_call_operand.hbm [shape: bf16[2,224,256], index: 0, kind: input, shape index: {}]   ;;  %s1255_s1 = inlined_call_operand.hbm [shape: bf16[256,128], index: 1, kind: input, shape index: {}]   ;;  %s1256_s2 = inlined_call_operand.vmem [shape: f32[1,128], index: 2, kind: input, shape index: {}]   ;;  %s1257_s3 = inlined_call_operand.hbm [shape: f32[2,224,128], index: 3, kind: output, shape index: {}]  }
   0x1   :  { %1265 = sst [smem:[#allocation14_spill]] %s1255_s1 }
   0x2   :  { %8 = vsyncpa [#allocation3], 0 }
   0x3   :  { %10 = vsyncpa [#allocation3 + $0x1], 0 }
   0x4   :  { %11 = vsyncpa [#allocation6], 0 }
   0x5   :  { %12 = vsyncpa [#allocation4], 0 }
   0x6   :  { %14 = vsyncpa [#allocation4 + $0x1], 0  ;;  %s1003_s12 = smov 0   ;;  %s1005_s13 = smov 0  }
   0x7   :  { %s1007_s14 = smov 0   ;;  %s1009_s15 = smov 0  }
   0x8   :  { %s1011_s16 = smov 0   ;;  %s1013_s17 = smov 0  }
   0x9   :  { %s1015_s18 = smov 0   ;;  %s1017_s19 = smov 0  }
   0xa LB: > { %1266 = sst [smem:[#allocation11_spill]] %s964_s17  ;;  %s592_s20 = sadd.s32 4294967295, %s972_s19   ;;  %s972_s19 = sphi %s1017_s19, %s20_s19   ;;  %s968_s18 = sphi %s1015_s18, %s1290_s18   ;;  %s964_s17 = sphi %s1013_s17, %s1284_s17   ;;  %s960_s16 = sphi %s1011_s16, %s1289_s16   ;;  %s956_s15 = sphi %s1009_s15, %s1283_s15   ;;  %s952_s14 = sphi %s1007_s14, %s1288_s14   ;;  %s948_s13 = sphi %s1005_s13, %s1287_s13   ;;  %s944_s12 = sphi %s1003_s12, %s1286_s12  }
   0xb   : > { %s593_s21 = sadd.s32 4294967294, %s972_s19   ;;  %p54_p0 = scmp.ne.s32.totalorder %s948_s13, %s944_s12 }
   0xc   : > { %p1047_p1 = scmp.eq.s32.totalorder %s592_s20, 0  ;;  %p1051_p2 = scmp.eq.s32.totalorder %s592_s20, 7 }
   0xd   : > { %p128_p3 = scmp.eq.s32.totalorder %s593_s21, 7  ;;  %p594_p5 = scmp.ge.s32.totalorder %s972_s19, 1 }
   0xe   : > { %s1267_s22 = scalar_select %p1047_p1, 1, 0 }
   0xf   : > { %s1268_s23 = scalar_select %p1051_p2, 1, 0 }
  0x10   : > { %p1057_p4 = por %p1047_p1, %p54_p0  ;;  %p1062_p6 = por %p128_p3, %p54_p0 }
  0x11   : > { %p135_p7 = scmp.lt.s32.totalorder %s972_s19, 9  ;;  %s974_s27 = smov [#allocation5]  }
  0x12   : > { %s1269_s24 = scalar_select %p1057_p4, 1, 0 }
  0x13   : > { %s1270_s25 = scalar_select %p1062_p6, 1, 0 }
  0x14   : > { %p1067_p8 = pnand %p594_p5, %p135_p7  ;;  %s147_s28 = sshll.u32 %s974_s27, 4  ;;  %s148_s28 = int_to_ptr.vmem [resolvable:$true] %s147_s28 }
  0x15   : > { %s1273_s1 = sld [smem:[#allocation14_spill]] }
  0x16   : > { %s1271_s26 = scalar_select %p1067_p8, 1, 0 }
  0x17   : > { %p698_p9 = pneg %p1067_p8 }
  0x19   : > { %p1075_p10 = pnand %p698_p9, %p1047_p1 }
  0x1b   : > { %s812_s5 = scalar_lea.hbm %s1273_s1, 2048  ;;  %p814_p12 = pneg %p1075_p10 }
  0x1c   : > { %p813_p11 = scmp.ne.s32.totalorder %s1273_s1, %s812_s5  ;;  %p819_p3 = scmp.lt.u32.totalorder %s812_s5, %s1273_s1 }
  0x1e   : > { %p815_p13 = pnand %p814_p12, %p813_p11 }
  0x20   : > { %p816_p0 = pneg %p815_p13 }
  0x22   : > { %p821_p5 = pnand %p819_p3, %p816_p0 }
  0x24   : > { %824 = shalt.err (!%p821_p5)
}
  0x25   : > { %s825_s10 = scalar_lea.vmem %s148_s28, 2048  ;;  %p833_p1 = scmp.lt.s32.totalorder %s148_s28, %s148_s28 }
  0x26   : > { %p826_p7 = scmp.ne.s32.totalorder %s148_s28, %s825_s10  ;;  %p834_p4 = scmp.lt.s32.totalorder %s825_s10, %s825_s10 }
  0x28   : > { %p828_p9 = pnand %p826_p7, %p814_p12  ;;  %p835_p8 = por %p834_p4, %p833_p1 }
  0x2a   : > { %p829_p6 = pneg %p828_p9 }
  0x2c   : > { %p836_p2 = pnand %p835_p8, %p829_p6 }
  0x2e   : > { %839 = shalt.err (!%p836_p2)
}
  0x2f   : > { %s975_s11 = smov 64   ;;  %s976_s20 = smov 4  }
  0x30   : > { %701 = dma.hbm_to_vmem [thread:$0]  (!%p1075_p10), %s1273_s1, 2048, %s148_s28, [#allocation6], %s975_s11, %s975_s11, %s976_s20  }
  0x31   : > { %s29_s30 = sadd.s32 1, %s964_s17  ;;  %s32_s4 = sadd.s32 1, %s968_s18 }
  0x32   : > { %p30_p1 = scmp.ge.s32.totalorder %s29_s30, 4  ;;  %s41_s5 = sadd.s32 1, %s952_s14 }
  0x33   : > { %p48_p2 = scmp.ne.s32.totalorder %s952_s14, %s948_s13  ;;  %p49_p4 = scmp.eq.s32.totalorder %s972_s19, 0 }
  0x34   : > { %s1292_s30 = smov (%p30_p1, %s29_s30), 0  ;;  %s1294_s4 = smov (!%p30_p1, %s32_s4), %s968_s18 }
  0x35   : > { %1274 = sst [smem:[#allocation12_spill]] %s1292_s30  ;;  %s37_s6 = ssub.s32 %s964_s17, %s1292_s30 }
  0x36   : > { %p34_p6 = scmp.ge.s32.totalorder %s1294_s4, 2  ;;  %p1275_p8 = scmp.ne.s32.totalorder %s1268_s23, 0 }
  0x37   : > { %p50_p10 = por %p49_p4, %p48_p2  ;;  %p711_p12 = scmp.lt.s32.totalorder %s972_s19, 8 }
  0x38   : > { %p1108_p11 = por %p1275_p8, %p48_p2  ;;  %s1296_s4 = smov (%p34_p6, %s1294_s4), 0 }
  0x39   : > { %1277 = sst [smem:[#allocation13_spill]] %s1296_s4  ;;  %s164_s28 = sand.u32 1, %s952_s14  }
  0x3a   : > { %s629_s7 = smul.u32 14, %s964_s17  ;;  %s36_s8 = ssub.s32 %s968_s18, %s1296_s4 }
  0x3b   : > { %s38_s9 = sor.u32 %s37_s6, %s36_s8  ;;  %s686_s10 = smul.u32 56, %s164_s28 }
  0x3c   : > { %p39_p13 = scmp.eq.s32.totalorder %s38_s9, 0  ;;  %s687_s11 = smul.u32 56, %s968_s18 }
  0x3d   : > { %p1120_p0 = pnand %p711_p12, %p50_p10  ;;  %s168_s27 = scalar_lea.vmem [#allocation2], %s686_s10 }
  0x3e   : > { %s1125_s23 = scalar_select %p39_p13, %s952_s14, %s41_s5  }
  0x3f   : > { %s175_s21 = sadd.s32 %s687_s11, %s629_s7  ;;  %s178_s1 = sshll.u32 %s168_s27, 4  ;;  %s1127_s1 = int_to_ptr.vmem [resolvable:$true] %s178_s1 }
  0x40   : > { %s598_s30 = sshll.u32 %s175_s21, 6  ;;  %s1134_s8 = scalar_lea.sflag [#allocation3], %s164_s28 }
  0x41   : > { %s1132_s6 = scalar_lea.hbm %s1254_s0, %s598_s30  ;;  %p842_p5 = pneg %p1120_p0 }
  0x42   : > { %s840_s9 = scalar_lea.hbm %s1132_s6, 896  ;;  %s845_s17 = scalar_lea.hbm %s1254_s0, 7168 }
  0x43   : > { %p841_p3 = scmp.ne.s32.totalorder %s1132_s6, %s840_s9  ;;  %p846_p1 = scmp.lt.u32.totalorder %s1132_s6, %s1254_s0 }
  0x44   : > { %p847_p2 = scmp.lt.u32.totalorder %s845_s17, %s840_s9  ;;  %p849_p6 = scmp.lt.u32.totalorder %s840_s9, %s1132_s6 }
  0x45   : > { %p843_p7 = pnand %p842_p5, %p841_p3 }
  0x46   : > { %p848_p4 = por %p847_p2, %p846_p1 }
  0x47   : > { %p844_p9 = pneg %p843_p7 }
  0x48   : > { %p850_p8 = por %p849_p6, %p848_p4 }
  0x4a   : > { %p851_p10 = pnand %p850_p8, %p844_p9 }
  0x4c   : > { %854 = shalt.err (!%p851_p10)
}
  0x4d   : > { %s855_s28 = scalar_lea.vmem %s1127_s1, 896  ;;  %s977_s10 = smov [#allocation2]  }
  0x4e   : > { %p856_p12 = scmp.ne.s32.totalorder %s1127_s1, %s855_s28  ;;  %s860_s11 = sshll.u32 %s977_s10, 4  ;;  %s861_s11 = int_to_ptr.vmem [resolvable:$false] %s860_s11 }
  0x4f   : > { %s862_s21 = scalar_lea.vmem %s861_s11, 1792  ;;  %p863_p7 = scmp.lt.s32.totalorder %s1127_s1, %s861_s11 }
  0x50   : > { %p858_p13 = pnand %p856_p12, %p842_p5  ;;  %p864_p1 = scmp.lt.s32.totalorder %s862_s21, %s855_s28 }
  0x52   : > { %p859_p3 = pneg %p858_p13  ;;  %p865_p2 = por %p864_p1, %p863_p7 }
  0x54   : > { %p866_p4 = pnand %p865_p2, %p859_p3 }
  0x56   : > { %869 = shalt.err (!%p866_p4)
}
  0x57   : > { %s978_s27 = smov 128   ;;  %s979_s9 = smov 8  }
  0x58   : > { %705 = dma.hbm_to_vmem [thread:$0]  (!%p1120_p0), %s1132_s6, 896, %s1127_s1, %s1134_s8, %s978_s27, %s978_s27, %s979_s9  }
  0x59   : > { %p1279_p5 = scmp.ne.s32.totalorder %s1271_s26, 0 }
  0x5a   : > { %s1165_s5 = sand.u32 (!%p1279_p5), 1, %s948_s13   ;;  %p1280_p9 = scmp.ne.s32.totalorder (!%p1279_p5), %s1269_s24, 0 }
  0x5b   : > { %190 = sbr.rel (%p1279_p5) target bundleno = 377 (0x179), region = 32  ;;  %s193_s17 = scalar_lea.sflag (!%p1279_p5), [#allocation3], %s1165_s5 }
  0x5c   : > { %s688_s7 = smul.u32 (!%p1279_p5), 56, %s1165_s5 }
  0x5e   : > { %s1171_s30 = scalar_lea.vmem (!%p1279_p5), [#allocation2], %s688_s7 }
  0x62   : > { %931 = dma.done.wait (%p1280_p9), %s193_s17, 896  }
  0x63   : > { %933 = vsyncadd (%p1280_p9), %s193_s17, 4294966400  ;;  %p1281_p0 = scmp.ne.s32.totalorder %s1267_s22, 0 }
  0x65   : > { %935 = dma.done.wait (%p1281_p0), [#allocation6], 2048  }
  0x66   : > { %937 = vsyncadd (%p1281_p0), [#allocation6], 4294965248  ;;  %v785_v0 = vld [vmem:[#allocation5 + $0x40] sm:$0xff]   ;;  %v787_v2 = vld [vmem:[#allocation5 + $0x48] sm:$0xff]   ;;  %s484_s24 = smul.u32 7, %s956_s15  ;;  %s222_s20 = scalar_lea.vmem [#allocation7], %s688_s7 }
  0x67   : > { %v786_v1 = vld [vmem:[#allocation5] sm:$0xff]   ;;  %630 = vmatprep.subr.bf16.mxu0 %v785_v0  ;;  %670 = vmatprep.subr.bf16.mxu1 %v785_v0  ;;  %v788_v3 = vld [vmem:[#allocation5 + $0x8] sm:$0xff]   ;;  %v789_v4 = vld [vmem:[#allocation5 + $0x50] sm:$0xff]   ;;  %s689_s26 = smul.u32 28, %s960_s16  ;;  %s492_s8 = sshll.u32 %s222_s20, 4  ;;  %s1195_s8 = int_to_ptr.vmem [resolvable:$true] %s492_s8 }
  0x68   : > { %631 = vmatpush3.bf16.msra.mxu0 %v786_v1  ;;  %678 = vmatpush3.bf16.msra.mxu1 %v786_v1  ;;  %v790_v5 = vld [vmem:[#allocation5 + $0x10] sm:$0xff]   ;;  %v791_v6 = vld [vmem:[#allocation5 + $0x58] sm:$0xff]   ;;  %v793_v8 = vld [vmem:[#allocation5 + $0x60] sm:$0xff]   ;;  %s477_s10 = scalar_lea.sflag [#allocation4], %s1165_s5  ;;  %s870_s11 = scalar_lea.vmem %s1195_s8, 896 }
  0x69   : > { %632 = vmatprep.subr.bf16.mxu0 %v787_v2  ;;  %671 = vmatprep.subr.bf16.mxu1 %v787_v2  ;;  %v792_v7 = vld [vmem:[#allocation5 + $0x18] sm:$0xff]   ;;  %v794_v9 = vld [vmem:[#allocation5 + $0x20] sm:$0xff]   ;;  %v795_v10 = vld [vmem:[#allocation5 + $0x68] sm:$0xff]   ;;  %s489_s6 = sadd.s32 %s689_s26, %s484_s24  ;;  %p871_p6 = scmp.ne.s32.totalorder %s1195_s8, %s870_s11 }
  0x6a   : > { %v803_v11 = vld [vmem:[%s1171_s30 + $0x4] ss:$8 sps:$4 sm:$0xff]   ;;  %v232_v18 = vld [vmem:[%s1171_s30 + $0x30] sm:$0xff]  ;;  %v801_v19 = vld [vmem:[%s1171_s30] ss:$8 sps:$4 sm:$0xff]   ;;  %s626_s15 = sshll.u32 %s489_s6, 7 }
  0x6b   : > { %v806_v12 = vld [vmem:[%s1171_s30 + $0x24] ss:$8 sps:$4 sm:$0xff]   ;;  %437 = vmatprep.mubr.bf16.mxu0 %v803_v11  ;;  %v804_v20 = vld [vmem:[%s1171_s30 + $0x20] ss:$8 sps:$4 sm:$0xff]   ;;  %v807_v21 = vld [vmem:[%s1171_s30 + $0x14] ss:$8 sps:$4 sm:$0xff]   ;;  %v609_v22 = vcombine.high %v232_v18, %v232_v18  ;;  %v608_v24 = vcombine.low %v232_v18, %v232_v18  ;;  %s1200_s28 = scalar_lea.hbm %s1257_s3, %s626_s15  ;;  %p872_p8 = pnand %p871_p6, %p1108_p11 }
  0x6c   : > { %633 = vmatpush3.bf16.msra.mxu0 %v788_v3  ;;  %679 = vmatpush3.bf16.msra.mxu1 %v788_v3  ;;  %v796_v13 = vld [vmem:[#allocation5 + $0x28] sm:$0xff]   ;;  %v797_v14 = vld [vmem:[#allocation5 + $0x70] sm:$0xff]   ;;  %v799_v16 = vld [vmem:[#allocation5 + $0x78] sm:$0xff]   ;;  %s980_s21 = smov [#allocation7]  }
  0x6d   : > { %634 = vmatprep.subr.bf16.mxu0 %v789_v4  ;;  %672 = vmatprep.subr.bf16.mxu1 %v789_v4  ;;  %v798_v15 = vld [vmem:[#allocation5 + $0x30] sm:$0xff]   ;;  %v800_v17 = vld [vmem:[#allocation5 + $0x38] sm:$0xff]   ;;  %p873_p10 = pneg %p872_p8  ;;  %s874_s27 = sshll.u32 %s980_s21, 4  ;;  %s875_s27 = int_to_ptr.vmem [resolvable:$false] %s874_s27 }
  0x6e   : > { %453 = vmatprep.mubr.bf16.mxu1 %v806_v12  ;;  %v810_v23 = vld [vmem:[%s1171_s30 + $0x10] ss:$8 sps:$4 sm:$0xff]   ;;  %v601_v27 = vld [vmem:[%s1256_s2] ss:$0 sm:$0xff]  ;;  %s876_s9 = scalar_lea.vmem %s875_s27, 1792  ;;  %p877_p12 = scmp.lt.s32.totalorder %s1195_s8, %s875_s27 }
  0x6f   : > { %p878_p13 = scmp.lt.s32.totalorder %s876_s9, %s870_s11 }
  0x70   : > { %635 = vmatpush3.bf16.msra.mxu0 %v790_v5  ;;  %680 = vmatpush3.bf16.msra.mxu1 %v790_v5 }
  0x71   : > { %636 = vmatprep.subr.bf16.mxu0 %v791_v6  ;;  %673 = vmatprep.subr.bf16.mxu1 %v791_v6  ;;  %p879_p3 = por %p878_p13, %p877_p12 }
  0x73   : > { %p880_p7 = pnand %p879_p3, %p873_p10 }
  0x74   : > { %637 = vmatpush3.bf16.msra.mxu0 %v792_v7  ;;  %681 = vmatpush3.bf16.msra.mxu1 %v792_v7 }
  0x75   : > { %638 = vmatprep.subr.bf16.mxu0 %v793_v8  ;;  %674 = vmatprep.subr.bf16.mxu1 %v793_v8 }
  0x78   : > { %639 = vmatpush3.bf16.msra.mxu0 %v794_v9  ;;  %682 = vmatpush3.bf16.msra.mxu1 %v794_v9 }
  0x79   : > { %640 = vmatprep.subr.bf16.mxu0 %v795_v10  ;;  %675 = vmatprep.subr.bf16.mxu1 %v795_v10 }
  0x7c   : > { %641 = vmatpush3.bf16.msra.mxu0 %v796_v13  ;;  %683 = vmatpush3.bf16.msra.mxu1 %v796_v13 }
  0x7d   : > { %642 = vmatprep.subr.bf16.mxu0 %v797_v14  ;;  %676 = vmatprep.subr.bf16.mxu1 %v797_v14 }
  0x80   : > { %643 = vmatpush3.bf16.msra.mxu0 %v798_v15  ;;  %684 = vmatpush3.bf16.msra.mxu1 %v798_v15 }
  0x81   : > { %644 = vmatprep.subr.bf16.mxu0 %v799_v16  ;;  %677 = vmatprep.subr.bf16.mxu1 %v799_v16 }
  0x84   : > { %645 = vmatpush3.bf16.msra.mxu0 %v800_v17  ;;  %685 = vmatpush3.bf16.msra.mxu1 %v800_v17 }
  0x87   : > { %438 = vmatmul.mubr.bf16.vlgmr.msra.gmra.mrb[0].mxu0 %v801_v19  ;;  %454 = vmatmul.mubr.bf16.vlgmr.msra.gmra.mrb[0].mxu1 %v804_v20 }
  0x88   : > { %445 = vmatprep.mubr.bf16.mxu0 %v807_v21  ;;  %461 = vmatprep.mubr.bf16.mxu1 %v609_v22 }
  0x8f   : > { %446 = vmatmul.mubr.bf16.gmra.mrb[4].mxu0 %v810_v23  ;;  %462 = vmatmul.mubr.bf16.gmra.mrb[4].mxu1 %v608_v24 }
 0x15a   : > { %v646_v25 = vpop.f32.mrb[0].mxu0  ;;  %v658_v26 = vpop.f32.mrb[0].mxu1 }
 0x15b   : > { %v647_v28 = vpop.f32.mrb[1].mxu0  ;;  %v659_v29 = vpop.f32.mrb[1].mxu1 }
 0x15c   : > { %v648_v30 = vadd.f32 %v647_v28, %v646_v25  ;;  %v660_v31 = vadd.f32 %v659_v29, %v658_v26  ;;  %v649_v32 = vpop.f32.mrb[2].mxu0  ;;  %v661_v33 = vpop.f32.mrb[2].mxu1 }
 0x15d   : > { %v650_v34 = vpop.f32.mrb[3].mxu0  ;;  %v662_v35 = vpop.f32.mrb[3].mxu1 }
 0x15e   : > { %v440_v36 = vadd.f32 %v648_v30, %v601_v27  ;;  %v456_v37 = vadd.f32 %v660_v31, %v601_v27  ;;  %v651_v38 = vadd.f32 %v650_v34, %v649_v32  ;;  %v663_v39 = vadd.f32 %v662_v35, %v661_v33 }
 0x160   : > { %469 = vst [vmem:[%s222_s20] sm:$0xff] %v440_v36  ;;  %473 = vst [vmem:[%s222_s20 + $0x20] sm:$0xff] %v456_v37  ;;  %v443_v40 = vadd.f32 %v651_v38, %v601_v27  ;;  %v459_v41 = vadd.f32 %v663_v39, %v601_v27 }
 0x162   : > { %470 = vst [vmem:[%s222_s20 + $0x8] sm:$0xff] %v443_v40  ;;  %474 = vst [vmem:[%s222_s20 + $0x28] sm:$0xff] %v459_v41  ;;  %v652_v42 = vpop.f32.mrb[4].mxu0  ;;  %v664_v43 = vpop.f32.mrb[4].mxu1 }
 0x163   : > { %v653_v44 = vpop.f32.mrb[5].mxu0  ;;  %v665_v45 = vpop.f32.mrb[5].mxu1 }
 0x164   : > { %v654_v46 = vadd.f32 %v653_v44, %v652_v42  ;;  %v666_v47 = vadd.f32 %v665_v45, %v664_v43  ;;  %v655_v48 = vpop.f32.mrb[6].mxu0  ;;  %v667_v49 = vpop.f32.mrb[6].mxu1 }
 0x165   : > { %v656_v50 = vpop.f32.mrb[7].mxu0  ;;  %v668_v51 = vpop.f32.mrb[7].mxu1 }
 0x166   : > { %v448_v52 = vadd.f32 %v654_v46, %v601_v27  ;;  %v464_v53 = vadd.f32 %v666_v47, %v601_v27  ;;  %v657_v54 = vadd.f32 %v656_v50, %v655_v48 }
 0x168   : > { %471 = vst [vmem:[%s222_s20 + $0x10] sm:$0xff] %v448_v52  ;;  %475 = vst [vmem:[%s222_s20 + $0x30] sm:$0xff] %v464_v53  ;;  %v451_v55 = vadd.f32 %v657_v54, %v601_v27 }
 0x16a   : > { %472 = vst [vmem:[%s222_s20 + $0x18] sm:$0xff] %v451_v55 }
 0x16b   : > { %883 = shalt.err (!%p880_p7)
}
 0x16c   : > { %s884_s7 = scalar_lea.hbm %s1200_s28, 896  ;;  %s888_s1 = scalar_lea.hbm %s1257_s3, 7168 }
 0x16d   : > { %p885_p1 = scmp.ne.s32.totalorder %s1200_s28, %s884_s7  ;;  %p889_p5 = scmp.lt.u32.totalorder %s1200_s28, %s1257_s3 }
 0x16e   : > { %p890_p9 = scmp.lt.u32.totalorder %s888_s1, %s884_s7  ;;  %p892_p6 = scmp.lt.u32.totalorder %s884_s7, %s1200_s28 }
 0x16f   : > { %p886_p2 = pnand %p885_p1, %p1108_p11 }
 0x170   : > { %p891_p0 = por %p890_p9, %p889_p5 }
 0x171   : > { %p887_p4 = pneg %p886_p2 }
 0x172   : > { %p893_p8 = por %p892_p6, %p891_p0 }
 0x174   : > { %p894_p10 = pnand %p893_p8, %p887_p4 }
 0x176   : > { %897 = shalt.err (!%p894_p10)
}
 0x177   : > { %s981_s26 = smov 128   ;;  %s982_s20 = smov 8  }
 0x178   : > { %696 = dma.vmem_to_hbm [thread:$0]  (%p1108_p11), %s1195_s8, 896, %s1200_s28, %s477_s10, %s981_s26, %s981_s26, %s982_s20  }
 0x179 PF: > { %p713_p12 = scmp.ge.s32.totalorder %s972_s19, 2  ;;  %s507_s6 = sand.u32 1, %s944_s12  }
 0x17a   : > { %p1282_p13 = scmp.ne.s32.totalorder %s1270_s25, 0  ;;  %s508_s15 = scalar_lea.sflag [#allocation4], %s507_s6 }
 0x17c   : > { %p707_p3 = pnand %p713_p12, %p1282_p13 }
 0x17e   : > { %939 = dma.done.wait (!%p707_p3), %s508_s15, 896  }
 0x17f   : > { %941 = vsyncadd (!%p707_p3), %s508_s15, 4294966400  ;;  %s20_s19 = sadd.s32 1, %s972_s19   ;;  %s1283_s15 = sld [smem:[#allocation11_spill]] }
 0x180   : > { %p17_p7 = scmp.ge.s32.totalorder %s20_s19, 10   ;;  %s1284_s17 = sld [smem:[#allocation12_spill]] }
 0x181   : > { %s1285_s29 = sld [smem:[#allocation13_spill]]  ;;  %s1286_s12 = smov %s948_s13 }
 0x182   : > { %s1287_s13 = smov %s952_s14  ;;  %s1288_s14 = smov %s1125_s23 }
 0x183   : > { %s1289_s16 = smov %s968_s18  ;;  %19 = sbr.rel (!%p17_p7) target bundleno = 10 (0xa), region = 81 }
 0x187   : > { %s1290_s18 = smov %s1285_s29 }
 0x18a   :  { %513 = vsyncpa [#allocation3], 1 }
 0x18b   :  { %515 = vsyncpa [#allocation3 + $0x1], 1 }
 0x18c   :  { %516 = vsyncpa [#allocation6], 1 }
 0x18d   :  { %517 = vsyncpa [#allocation4], 1 }
 0x18e   :  { %519 = vsyncpa [#allocation4 + $0x1], 1 }

// kernel: tpu_custom_call.1
= control target key start
LH: loop header
LB: loop body
LE: loop exit
PB: predicated region body
PF: predicated region fallthrough
CT: control target
= control target key end

     0   :  { %s1254_s0 = inlined_call_operand.hbm [shape: bf16[2,224,256], index: 0, kind: input, shape index: {}]   ;;  %s1255_s1 = inlined_call_operand.hbm [shape: bf16[256,128], index: 1, kind: input, shape index: {}]   ;;  %s1256_s2 = inlined_call_operand.vmem [shape: f32[1,128], index: 2, kind: input, shape index: {}]   ;;  %s1257_s3 = inlined_call_operand.hbm [shape: f32[2,224,128], index: 3, kind: output, shape index: {}]  }
   0x1   :  { %1265 = sst [smem:[#allocation14_spill]] %s1255_s1 }
   0x2   :  { %8 = vsyncpa [#allocation3], 0 }
   0x3   :  { %10 = vsyncpa [#allocation3 + $0x1], 0 }
   0x4   :  { %11 = vsyncpa [#allocation6], 0 }
   0x5   :  { %12 = vsyncpa [#allocation4], 0 }
   0x6   :  { %14 = vsyncpa [#allocation4 + $0x1], 0  ;;  %s1003_s12 = smov 0   ;;  %s1005_s13 = smov 0  }
   0x7   :  { %s1007_s14 = smov 0   ;;  %s1009_s15 = smov 0  }
   0x8   :  { %s1011_s16 = smov 0   ;;  %s1013_s17 = smov 0  }
   0x9   :  { %s1015_s18 = smov 0   ;;  %s1017_s19 = smov 0  }
   0xa LB: > { %1266 = sst [smem:[#allocation11_spill]] %s964_s17  ;;  %s592_s20 = sadd.s32 4294967295, %s972_s19   ;;  %s972_s19 = sphi %s1017_s19, %s20_s19   ;;  %s968_s18 = sphi %s1015_s18, %s1290_s18   ;;  %s964_s17 = sphi %s1013_s17, %s1284_s17   ;;  %s960_s16 = sphi %s1011_s16, %s1289_s16   ;;  %s956_s15 = sphi %s1009_s15, %s1283_s15   ;;  %s952_s14 = sphi %s1007_s14, %s1288_s14   ;;  %s948_s13 = sphi %s1005_s13, %s1287_s13   ;;  %s944_s12 = sphi %s1003_s12, %s1286_s12  }
   0xb   : > { %s593_s21 = sadd.s32 4294967294, %s972_s19   ;;  %p54_p0 = scmp.ne.s32.totalorder %s948_s13, %s944_s12 }
   0xc   : > { %p1047_p1 = scmp.eq.s32.totalorder %s592_s20, 0  ;;  %p1051_p2 = scmp.eq.s32.totalorder %s592_s20, 7 }
   0xd   : > { %p128_p3 = scmp.eq.s32.totalorder %s593_s21, 7  ;;  %p594_p5 = scmp.ge.s32.totalorder %s972_s19, 1 }
   0xe   : > { %s1267_s22 = scalar_select %p1047_p1, 1, 0 }
   0xf   : > { %s1268_s23 = scalar_select %p1051_p2, 1, 0 }
  0x10   : > { %p1057_p4 = por %p1047_p1, %p54_p0  ;;  %p1062_p6 = por %p128_p3, %p54_p0 }
  0x11   : > { %p135_p7 = scmp.lt.s32.totalorder %s972_s19, 9  ;;  %s974_s27 = smov [#allocation5]  }
  0x12   : > { %s1269_s24 = scalar_select %p1057_p4, 1, 0 }
  0x13   : > { %s1270_s25 = scalar_select %p1062_p6, 1, 0 }
  0x14   : > { %p1067_p8 = pnand %p594_p5, %p135_p7  ;;  %s147_s28 = sshll.u32 %s974_s27, 4  ;;  %s148_s28 = int_to_ptr.vmem [resolvable:$true] %s147_s28 }
  0x15   : > { %s1273_s1 = sld [smem:[#allocation14_spill]] }
  0x16   : > { %s1271_s26 = scalar_select %p1067_p8, 1, 0 }
  0x17   : > { %p698_p9 = pneg %p1067_p8 }
  0x19   : > { %p1075_p10 = pnand %p698_p9, %p1047_p1 }
  0x1b   : > { %s812_s5 = scalar_lea.hbm %s1273_s1, 2048  ;;  %p814_p12 = pneg %p1075_p10 }
  0x1c   : > { %p813_p11 = scmp.ne.s32.totalorder %s1273_s1, %s812_s5  ;;  %p819_p3 = scmp.lt.u32.totalorder %s812_s5, %s1273_s1 }
  0x1e   : > { %p815_p13 = pnand %p814_p12, %p813_p11 }
  0x20   : > { %p816_p0 = pneg %p815_p13 }
  0x22   : > { %p821_p5 = pnand %p819_p3, %p816_p0 }
  0x24   : > { %824 = shalt.err (!%p821_p5)
}
  0x25   : > { %s825_s10 = scalar_lea.vmem %s148_s28, 2048  ;;  %p833_p1 = scmp.lt.s32.totalorder %s148_s28, %s148_s28 }
  0x26   : > { %p826_p7 = scmp.ne.s32.totalorder %s148_s28, %s825_s10  ;;  %p834_p4 = scmp.lt.s32.totalorder %s825_s10, %s825_s10 }
  0x28   : > { %p828_p9 = pnand %p826_p7, %p814_p12  ;;  %p835_p8 = por %p834_p4, %p833_p1 }
  0x2a   : > { %p829_p6 = pneg %p828_p9 }
  0x2c   : > { %p836_p2 = pnand %p835_p8, %p829_p6 }
  0x2e   : > { %839 = shalt.err (!%p836_p2)
}
  0x2f   : > { %s975_s11 = smov 64   ;;  %s976_s20 = smov 4  }
  0x30   : > { %701 = dma.hbm_to_vmem [thread:$0]  (!%p1075_p10), %s1273_s1, 2048, %s148_s28, [#allocation6], %s975_s11, %s975_s11, %s976_s20  }
  0x31   : > { %s29_s30 = sadd.s32 1, %s964_s17  ;;  %s32_s4 = sadd.s32 1, %s968_s18 }
  0x32   : > { %p30_p1 = scmp.ge.s32.totalorder %s29_s30, 4  ;;  %s41_s5 = sadd.s32 1, %s952_s14 }
  0x33   : > { %p48_p2 = scmp.ne.s32.totalorder %s952_s14, %s948_s13  ;;  %p49_p4 = scmp.eq.s32.totalorder %s972_s19, 0 }
  0x34   : > { %s1292_s30 = smov (%p30_p1, %s29_s30), 0  ;;  %s1294_s4 = smov (!%p30_p1, %s32_s4), %s968_s18 }
  0x35   : > { %1274 = sst [smem:[#allocation12_spill]] %s1292_s30  ;;  %s37_s6 = ssub.s32 %s964_s17, %s1292_s30 }
  0x36   : > { %p34_p6 = scmp.ge.s32.totalorder %s1294_s4, 2  ;;  %p1275_p8 = scmp.ne.s32.totalorder %s1268_s23, 0 }
  0x37   : > { %p50_p10 = por %p49_p4, %p48_p2  ;;  %p711_p12 = scmp.lt.s32.totalorder %s972_s19, 8 }
  0x38   : > { %p1108_p11 = por %p1275_p8, %p48_p2  ;;  %s1296_s4 = smov (%p34_p6, %s1294_s4), 0 }
  0x39   : > { %1277 = sst [smem:[#allocation13_spill]] %s1296_s4  ;;  %s164_s28 = sand.u32 1, %s952_s14  }
  0x3a   : > { %s629_s7 = smul.u32 14, %s964_s17  ;;  %s36_s8 = ssub.s32 %s968_s18, %s1296_s4 }
  0x3b   : > { %s38_s9 = sor.u32 %s37_s6, %s36_s8  ;;  %s686_s10 = smul.u32 56, %s164_s28 }
  0x3c   : > { %p39_p13 = scmp.eq.s32.totalorder %s38_s9, 0  ;;  %s687_s11 = smul.u32 56, %s968_s18 }
  0x3d   : > { %p1120_p0 = pnand %p711_p12, %p50_p10  ;;  %s168_s27 = scalar_lea.vmem [#allocation2], %s686_s10 }
  0x3e   : > { %s1125_s23 = scalar_select %p39_p13, %s952_s14, %s41_s5  }
  0x3f   : > { %s175_s21 = sadd.s32 %s687_s11, %s629_s7  ;;  %s178_s1 = sshll.u32 %s168_s27, 4  ;;  %s1127_s1 = int_to_ptr.vmem [resolvable:$true] %s178_s1 }
  0x40   : > { %s598_s30 = sshll.u32 %s175_s21, 6  ;;  %s1134_s8 = scalar_lea.sflag [#allocation3], %s164_s28 }
  0x41   : > { %s1132_s6 = scalar_lea.hbm %s1254_s0, %s598_s30  ;;  %p842_p5 = pneg %p1120_p0 }
  0x42   : > { %s840_s9 = scalar_lea.hbm %s1132_s6, 896  ;;  %s845_s17 = scalar_lea.hbm %s1254_s0, 7168 }
  0x43   : > { %p841_p3 = scmp.ne.s32.totalorder %s1132_s6, %s840_s9  ;;  %p846_p1 = scmp.lt.u32.totalorder %s1132_s6, %s1254_s0 }
  0x44   : > { %p847_p2 = scmp.lt.u32.totalorder %s845_s17, %s840_s9  ;;  %p849_p6 = scmp.lt.u32.totalorder %s840_s9, %s1132_s6 }
  0x45   : > { %p843_p7 = pnand %p842_p5, %p841_p3 }
  0x46   : > { %p848_p4 = por %p847_p2, %p846_p1 }
  0x47   : > { %p844_p9 = pneg %p843_p7 }
  0x48   : > { %p850_p8 = por %p849_p6, %p848_p4 }
  0x4a   : > { %p851_p10 = pnand %p850_p8, %p844_p9 }
  0x4c   : > { %854 = shalt.err (!%p851_p10)
}
  0x4d   : > { %s855_s28 = scalar_lea.vmem %s1127_s1, 896  ;;  %s977_s10 = smov [#allocation2]  }
  0x4e   : > { %p856_p12 = scmp.ne.s32.totalorder %s1127_s1, %s855_s28  ;;  %s860_s11 = sshll.u32 %s977_s10, 4  ;;  %s861_s11 = int_to_ptr.vmem [resolvable:$false] %s860_s11 }
  0x4f   : > { %s862_s21 = scalar_lea.vmem %s861_s11, 1792  ;;  %p863_p7 = scmp.lt.s32.totalorder %s1127_s1, %s861_s11 }
  0x50   : > { %p858_p13 = pnand %p856_p12, %p842_p5  ;;  %p864_p1 = scmp.lt.s32.totalorder %s862_s21, %s855_s28 }
  0x52   : > { %p859_p3 = pneg %p858_p13  ;;  %p865_p2 = por %p864_p1, %p863_p7 }
  0x54   : > { %p866_p4 = pnand %p865_p2, %p859_p3 }
  0x56   : > { %869 = shalt.err (!%p866_p4)
}
  0x57   : > { %s978_s27 = smov 128   ;;  %s979_s9 = smov 8  }
  0x58   : > { %705 = dma.hbm_to_vmem [thread:$0]  (!%p1120_p0), %s1132_s6, 896, %s1127_s1, %s1134_s8, %s978_s27, %s978_s27, %s979_s9  }
  0x59   : > { %p1279_p5 = scmp.ne.s32.totalorder %s1271_s26, 0 }
  0x5a   : > { %s1165_s5 = sand.u32 (!%p1279_p5), 1, %s948_s13   ;;  %p1280_p9 = scmp.ne.s32.totalorder (!%p1279_p5), %s1269_s24, 0 }
  0x5b   : > { %190 = sbr.rel (%p1279_p5) target bundleno = 377 (0x179), region = 32  ;;  %s193_s17 = scalar_lea.sflag (!%p1279_p5), [#allocation3], %s1165_s5 }
  0x5c   : > { %s688_s7 = smul.u32 (!%p1279_p5), 56, %s1165_s5 }
  0x5e   : > { %s1171_s30 = scalar_lea.vmem (!%p1279_p5), [#allocation2], %s688_s7 }
  0x62   : > { %931 = dma.done.wait (%p1280_p9), %s193_s17, 896  }
  0x63   : > { %933 = vsyncadd (%p1280_p9), %s193_s17, 4294966400  ;;  %p1281_p0 = scmp.ne.s32.totalorder %s1267_s22, 0 }
  0x65   : > { %935 = dma.done.wait (%p1281_p0), [#allocation6], 2048  }
  0x66   : > { %937 = vsyncadd (%p1281_p0), [#allocation6], 4294965248  ;;  %v785_v0 = vld [vmem:[#allocation5 + $0x40] sm:$0xff]   ;;  %v787_v2 = vld [vmem:[#allocation5 + $0x48] sm:$0xff]   ;;  %s484_s24 = smul.u32 7, %s956_s15  ;;  %s222_s20 = scalar_lea.vmem [#allocation7], %s688_s7 }
  0x67   : > { %v786_v1 = vld [vmem:[#allocation5] sm:$0xff]   ;;  %630 = vmatprep.subr.bf16.mxu0 %v785_v0  ;;  %670 = vmatprep.subr.bf16.mxu1 %v785_v0  ;;  %v788_v3 = vld [vmem:[#allocation5 + $0x8] sm:$0xff]   ;;  %v789_v4 = vld [vmem:[#allocation5 + $0x50] sm:$0xff]   ;;  %s689_s26 = smul.u32 28, %s960_s16  ;;  %s492_s8 = sshll.u32 %s222_s20, 4  ;;  %s1195_s8 = int_to_ptr.vmem [resolvable:$true] %s492_s8 }
  0x68   : > { %631 = vmatpush3.bf16.msra.mxu0 %v786_v1  ;;  %678 = vmatpush3.bf16.msra.mxu1 %v786_v1  ;;  %v790_v5 = vld [vmem:[#allocation5 + $0x10] sm:$0xff]   ;;  %v791_v6 = vld [vmem:[#allocation5 + $0x58] sm:$0xff]   ;;  %v793_v8 = vld [vmem:[#allocation5 + $0x60] sm:$0xff]   ;;  %s477_s10 = scalar_lea.sflag [#allocation4], %s1165_s5  ;;  %s870_s11 = scalar_lea.vmem %s1195_s8, 896 }
  0x69   : > { %632 = vmatprep.subr.bf16.mxu0 %v787_v2  ;;  %671 = vmatprep.subr.bf16.mxu1 %v787_v2  ;;  %v792_v7 = vld [vmem:[#allocation5 + $0x18] sm:$0xff]   ;;  %v794_v9 = vld [vmem:[#allocation5 + $0x20] sm:$0xff]   ;;  %v795_v10 = vld [vmem:[#allocation5 + $0x68] sm:$0xff]   ;;  %s489_s6 = sadd.s32 %s689_s26, %s484_s24  ;;  %p871_p6 = scmp.ne.s32.totalorder %s1195_s8, %s870_s11 }
  0x6a   : > { %v803_v11 = vld [vmem:[%s1171_s30 + $0x4] ss:$8 sps:$4 sm:$0xff]   ;;  %v232_v18 = vld [vmem:[%s1171_s30 + $0x30] sm:$0xff]  ;;  %v801_v19 = vld [vmem:[%s1171_s30] ss:$8 sps:$4 sm:$0xff]   ;;  %s626_s15 = sshll.u32 %s489_s6, 7 }
  0x6b   : > { %v806_v12 = vld [vmem:[%s1171_s30 + $0x24] ss:$8 sps:$4 sm:$0xff]   ;;  %437 = vmatprep.mubr.bf16.mxu0 %v803_v11  ;;  %v804_v20 = vld [vmem:[%s1171_s30 + $0x20] ss:$8 sps:$4 sm:$0xff]   ;;  %v807_v21 = vld [vmem:[%s1171_s30 + $0x14] ss:$8 sps:$4 sm:$0xff]   ;;  %v609_v22 = vcombine.high %v232_v18, %v232_v18  ;;  %v608_v24 = vcombine.low %v232_v18, %v232_v18  ;;  %s1200_s28 = scalar_lea.hbm %s1257_s3, %s626_s15  ;;  %p872_p8 = pnand %p871_p6, %p1108_p11 }
  0x6c   : > { %633 = vmatpush3.bf16.msra.mxu0 %v788_v3  ;;  %679 = vmatpush3.bf16.msra.mxu1 %v788_v3  ;;  %v796_v13 = vld [vmem:[#allocation5 + $0x28] sm:$0xff]   ;;  %v797_v14 = vld [vmem:[#allocation5 + $0x70] sm:$0xff]   ;;  %v799_v16 = vld [vmem:[#allocation5 + $0x78] sm:$0xff]   ;;  %s980_s21 = smov [#allocation7]  }
  0x6d   : > { %634 = vmatprep.subr.bf16.mxu0 %v789_v4  ;;  %672 = vmatprep.subr.bf16.mxu1 %v789_v4  ;;  %v798_v15 = vld [vmem:[#allocation5 + $0x30] sm:$0xff]   ;;  %v800_v17 = vld [vmem:[#allocation5 + $0x38] sm:$0xff]   ;;  %p873_p10 = pneg %p872_p8  ;;  %s874_s27 = sshll.u32 %s980_s21, 4  ;;  %s875_s27 = int_to_ptr.vmem [resolvable:$false] %s874_s27 }
  0x6e   : > { %453 = vmatprep.mubr.bf16.mxu1 %v806_v12  ;;  %v810_v23 = vld [vmem:[%s1171_s30 + $0x10] ss:$8 sps:$4 sm:$0xff]   ;;  %v601_v27 = vld [vmem:[%s1256_s2] ss:$0 sm:$0xff]  ;;  %s876_s9 = scalar_lea.vmem %s875_s27, 1792  ;;  %p877_p12 = scmp.lt.s32.totalorder %s1195_s8, %s875_s27 }
  0x6f   : > { %p878_p13 = scmp.lt.s32.totalorder %s876_s9, %s870_s11 }
  0x70   : > { %635 = vmatpush3.bf16.msra.mxu0 %v790_v5  ;;  %680 = vmatpush3.bf16.msra.mxu1 %v790_v5 }
  0x71   : > { %636 = vmatprep.subr.bf16.mxu0 %v791_v6  ;;  %673 = vmatprep.subr.bf16.mxu1 %v791_v6  ;;  %p879_p3 = por %p878_p13, %p877_p12 }
  0x73   : > { %p880_p7 = pnand %p879_p3, %p873_p10 }
  0x74   : > { %637 = vmatpush3.bf16.msra.mxu0 %v792_v7  ;;  %681 = vmatpush3.bf16.msra.mxu1 %v792_v7 }
  0x75   : > { %638 = vmatprep.subr.bf16.mxu0 %v793_v8  ;;  %674 = vmatprep.subr.bf16.mxu1 %v793_v8 }
  0x78   : > { %639 = vmatpush3.bf16.msra.mxu0 %v794_v9  ;;  %682 = vmatpush3.bf16.msra.mxu1 %v794_v9 }
  0x79   : > { %640 = vmatprep.subr.bf16.mxu0 %v795_v10  ;;  %675 = vmatprep.subr.bf16.mxu1 %v795_v10 }
  0x7c   : > { %641 = vmatpush3.bf16.msra.mxu0 %v796_v13  ;;  %683 = vmatpush3.bf16.msra.mxu1 %v796_v13 }
  0x7d   : > { %642 = vmatprep.subr.bf16.mxu0 %v797_v14  ;;  %676 = vmatprep.subr.bf16.mxu1 %v797_v14 }
  0x80   : > { %643 = vmatpush3.bf16.msra.mxu0 %v798_v15  ;;  %684 = vmatpush3.bf16.msra.mxu1 %v798_v15 }
  0x81   : > { %644 = vmatprep.subr.bf16.mxu0 %v799_v16  ;;  %677 = vmatprep.subr.bf16.mxu1 %v799_v16 }
  0x84   : > { %645 = vmatpush3.bf16.msra.mxu0 %v800_v17  ;;  %685 = vmatpush3.bf16.msra.mxu1 %v800_v17 }
  0x87   : > { %438 = vmatmul.mubr.bf16.vlgmr.msra.gmra.mrb[0].mxu0 %v801_v19  ;;  %454 = vmatmul.mubr.bf16.vlgmr.msra.gmra.mrb[0].mxu1 %v804_v20 }
  0x88   : > { %445 = vmatprep.mubr.bf16.mxu0 %v807_v21  ;;  %461 = vmatprep.mubr.bf16.mxu1 %v609_v22 }
  0x8f   : > { %446 = vmatmul.mubr.bf16.gmra.mrb[4].mxu0 %v810_v23  ;;  %462 = vmatmul.mubr.bf16.gmra.mrb[4].mxu1 %v608_v24 }
 0x15a   : > { %v646_v25 = vpop.f32.mrb[0].mxu0  ;;  %v658_v26 = vpop.f32.mrb[0].mxu1 }
 0x15b   : > { %v647_v28 = vpop.f32.mrb[1].mxu0  ;;  %v659_v29 = vpop.f32.mrb[1].mxu1 }
 0x15c   : > { %v648_v30 = vadd.f32 %v647_v28, %v646_v25  ;;  %v660_v31 = vadd.f32 %v659_v29, %v658_v26  ;;  %v649_v32 = vpop.f32.mrb[2].mxu0  ;;  %v661_v33 = vpop.f32.mrb[2].mxu1 }
 0x15d   : > { %v650_v34 = vpop.f32.mrb[3].mxu0  ;;  %v662_v35 = vpop.f32.mrb[3].mxu1 }
 0x15e   : > { %v440_v36 = vadd.f32 %v648_v30, %v601_v27  ;;  %v456_v37 = vadd.f32 %v660_v31, %v601_v27  ;;  %v651_v38 = vadd.f32 %v650_v34, %v649_v32  ;;  %v663_v39 = vadd.f32 %v662_v35, %v661_v33 }
 0x160   : > { %469 = vst [vmem:[%s222_s20] sm:$0xff] %v440_v36  ;;  %473 = vst [vmem:[%s222_s20 + $0x20] sm:$0xff] %v456_v37  ;;  %v443_v40 = vadd.f32 %v651_v38, %v601_v27  ;;  %v459_v41 = vadd.f32 %v663_v39, %v601_v27 }
 0x162   : > { %470 = vst [vmem:[%s222_s20 + $0x8] sm:$0xff] %v443_v40  ;;  %474 = vst [vmem:[%s222_s20 + $0x28] sm:$0xff] %v459_v41  ;;  %v652_v42 = vpop.f32.mrb[4].mxu0  ;;  %v664_v43 = vpop.f32.mrb[4].mxu1 }
 0x163   : > { %v653_v44 = vpop.f32.mrb[5].mxu0  ;;  %v665_v45 = vpop.f32.mrb[5].mxu1 }
 0x164   : > { %v654_v46 = vadd.f32 %v653_v44, %v652_v42  ;;  %v666_v47 = vadd.f32 %v665_v45, %v664_v43  ;;  %v655_v48 = vpop.f32.mrb[6].mxu0  ;;  %v667_v49 = vpop.f32.mrb[6].mxu1 }
 0x165   : > { %v656_v50 = vpop.f32.mrb[7].mxu0  ;;  %v668_v51 = vpop.f32.mrb[7].mxu1 }
 0x166   : > { %v448_v52 = vadd.f32 %v654_v46, %v601_v27  ;;  %v464_v53 = vadd.f32 %v666_v47, %v601_v27  ;;  %v657_v54 = vadd.f32 %v656_v50, %v655_v48 }
 0x168   : > { %471 = vst [vmem:[%s222_s20 + $0x10] sm:$0xff] %v448_v52  ;;  %475 = vst [vmem:[%s222_s20 + $0x30] sm:$0xff] %v464_v53  ;;  %v451_v55 = vadd.f32 %v657_v54, %v601_v27 }
 0x16a   : > { %472 = vst [vmem:[%s222_s20 + $0x18] sm:$0xff] %v451_v55 }
 0x16b   : > { %883 = shalt.err (!%p880_p7)
}
 0x16c   : > { %s884_s7 = scalar_lea.hbm %s1200_s28, 896  ;;  %s888_s1 = scalar_lea.hbm %s1257_s3, 7168 }
 0x16d   : > { %p885_p1 = scmp.ne.s32.totalorder %s1200_s28, %s884_s7  ;;  %p889_p5 = scmp.lt.u32.totalorder %s1200_s28, %s1257_s3 }
 0x16e   : > { %p890_p9 = scmp.lt.u32.totalorder %s888_s1, %s884_s7  ;;  %p892_p6 = scmp.lt.u32.totalorder %s884_s7, %s1200_s28 }
 0x16f   : > { %p886_p2 = pnand %p885_p1, %p1108_p11 }
 0x170   : > { %p891_p0 = por %p890_p9, %p889_p5 }
 0x171   : > { %p887_p4 = pneg %p886_p2 }
 0x172   : > { %p893_p8 = por %p892_p6, %p891_p0 }
 0x174   : > { %p894_p10 = pnand %p893_p8, %p887_p4 }
 0x176   : > { %897 = shalt.err (!%p894_p10)
}
 0x177   : > { %s981_s26 = smov 128   ;;  %s982_s20 = smov 8  }
 0x178   : > { %696 = dma.vmem_to_hbm [thread:$0]  (%p1108_p11), %s1195_s8, 896, %s1200_s28, %s477_s10, %s981_s26, %s981_s26, %s982_s20  }
 0x179 PF: > { %p713_p12 = scmp.ge.s32.totalorder %s972_s19, 2  ;;  %s507_s6 = sand.u32 1, %s944_s12  }
 0x17a   : > { %p1282_p13 = scmp.ne.s32.totalorder %s1270_s25, 0  ;;  %s508_s15 = scalar_lea.sflag [#allocation4], %s507_s6 }
 0x17c   : > { %p707_p3 = pnand %p713_p12, %p1282_p13 }
 0x17e   : > { %939 = dma.done.wait (!%p707_p3), %s508_s15, 896  }
 0x17f   : > { %941 = vsyncadd (!%p707_p3), %s508_s15, 4294966400  ;;  %s20_s19 = sadd.s32 1, %s972_s19   ;;  %s1283_s15 = sld [smem:[#allocation11_spill]] }
 0x180   : > { %p17_p7 = scmp.ge.s32.totalorder %s20_s19, 10   ;;  %s1284_s17 = sld [smem:[#allocation12_spill]] }
 0x181   : > { %s1285_s29 = sld [smem:[#allocation13_spill]]  ;;  %s1286_s12 = smov %s948_s13 }
 0x182   : > { %s1287_s13 = smov %s952_s14  ;;  %s1288_s14 = smov %s1125_s23 }
 0x183   : > { %s1289_s16 = smov %s968_s18  ;;  %19 = sbr.rel (!%p17_p7) target bundleno = 10 (0xa), region = 81 }
 0x187   : > { %s1290_s18 = smov %s1285_s29 }
 0x18a   :  { %513 = vsyncpa [#allocation3], 1 }
 0x18b   :  { %515 = vsyncpa [#allocation3 + $0x1], 1 }
 0x18c   :  { %516 = vsyncpa [#allocation6], 1 }
 0x18d   :  { %517 = vsyncpa [#allocation4], 1 }
 0x18e   :  { %519 = vsyncpa [#allocation4 + $0x1], 1 }

</bundles_post_ra>
